<compile_context>
chip_gen: v6e
topology: v6e:2x2x1
jax: 0.10.0
libtpu: 0.0.40
codegen_flags: <defaults>
</compile_context>

<pallas_src>
import functools

import jax
import jax.numpy as jnp
from jax.experimental import pallas as pl
from jax.experimental.pallas import tpu as pltpu

# Small, consistent shapes (embedding_dim must be divisible by num_heads)
BATCH = 2
SEQ = 8
EMBED = 32
HEADS = 4
HEAD_DIM = EMBED // HEADS
EPS = 1e-5  # nn.LayerNorm default eps


def msa_kernel(x_ref, vec_ref, wqkv_ref, wo_ref, out_ref, *, batch, seq, heads):
    """Single grid-less invocation: the whole (B*S, E) problem lives in VMEM.

    vec_ref rows: 0 = ln_w (first E lanes), 1 = ln_b (first E lanes),
                  2 = packed qkv bias (3E lanes, Q part pre-scaled),
                  3 = out-proj bias (first E lanes).
    wqkv_ref: (E, 3E) packed [Wq*scale | Wk | Wv].
    """
    emb = x_ref.shape[-1]
    hd = emb // heads

    x = x_ref[...]                                            # (B*S, E) f32

    # --- LayerNorm over last dim (biased variance, eps=1e-5) ---
    mean = jnp.mean(x, axis=-1, keepdims=True)
    var = jnp.mean((x - mean) ** 2, axis=-1, keepdims=True)
    xn = (x - mean) * jax.lax.rsqrt(var + EPS)
    xn = xn * vec_ref[0:1, 0:emb] + vec_ref[1:2, 0:emb]

    # --- Fused QKV projection: one (B*S, E) @ (E, 3E) MXU matmul + one bias add.
    #     1/sqrt(hd) is already folded into the Q columns of wqkv / the Q bias.
    qkv = jnp.dot(xn, wqkv_ref[...],
                  preferred_element_type=jnp.float32) + vec_ref[2:3, :]

    # --- Per-head attention, batched over the batch dim.
    #     Head outputs stay in registers; no VMEM scratch / masked partial stores.
    head_outs = []
    for h in range(heads):
        c0 = h * hd
        qh = qkv[:, c0:c0 + hd].reshape(batch, seq, hd)                   # (B,S,hd)
        kh = qkv[:, emb + c0:emb + c0 + hd].reshape(batch, seq, hd)       # (B,S,hd)
        vh = qkv[:, 2 * emb + c0:2 * emb + c0 + hd].reshape(batch, seq, hd)
        # Transpose-free, batched score matmul (contract hd, batch over B).
        s = jnp.einsum("bqd,bkd->bqk", qh, kh,
                       preferred_element_type=jnp.float32)                # (B,S,S)
        m = jnp.max(s, axis=-1, keepdims=True)
        p = jnp.exp(s - m)
        p = p * pl.reciprocal(jnp.sum(p, axis=-1, keepdims=True), approx=True)
        o = jnp.einsum("bqk,bkd->bqd", p, vh,
                       preferred_element_type=jnp.float32)                # (B,S,hd)
        head_outs.append(o.reshape(batch * seq, hd))                      # batches stacked along rows

    attn = jnp.concatenate(head_outs, axis=-1)                            # (B*S, E), in vregs

    # --- Single fused output projection ---
    y = jnp.dot(attn, wo_ref[...],
                preferred_element_type=jnp.float32) + vec_ref[3:4, 0:emb]
    out_ref[...] = y.astype(out_ref.dtype)


def prepare_params(ln_w, ln_b, wq, wk, wv, bq, bk, bv, wo, bo):
    """One-time parameter packing, OUTSIDE the jitted per-call path.

    Folds the attention scale into the Q weight/bias and packs the four tiny
    vectors into a single (4, 3E) operand (one DMA / one VMEM tile).
    """
    E = wq.shape[0]
    scale = 1.0 / (HEAD_DIM ** 0.5)
    wqkv = jnp.concatenate([wq * scale, wk, wv], axis=1)       # (E, 3E)
    bqkv = jnp.concatenate([bq * scale, bk, bv], axis=1)       # (1, 3E)
    vecs = jnp.zeros((4, 3 * E), jnp.float32)
    vecs = vecs.at[0, :E].set(ln_w[0])
    vecs = vecs.at[1, :E].set(ln_b[0])
    vecs = vecs.at[2, :].set(bqkv[0])
    vecs = vecs.at[3, :E].set(bo[0])
    return vecs, wqkv, wo


@jax.jit
def msa_block(x, vecs, wqkv, wo):
    B, S, E = x.shape
    x2d = x.reshape(B * S, E)

    vmem = pl.BlockSpec(memory_space=pltpu.MemorySpace.VMEM)
    kernel = functools.partial(msa_kernel, batch=B, seq=S, heads=HEADS)

    hd = E // HEADS
    flops = (2 * B * S * E * 3 * E                 # fused QKV projection
             + 4 * B * HEADS * S * S * hd          # scores + p@v
             + 2 * B * S * E * E)                  # output projection
    bytes_accessed = 4 * (x2d.size + vecs.size + wqkv.size + wo.size + x2d.size)
    cost = pl.CostEstimate(flops=flops,
                           transcendentals=B * HEADS * S * S,
                           bytes_accessed=bytes_accessed)

    # Grid-less: one invocation, weights DMA'd exactly once, no scratch.
    out2d = pl.pallas_call(
        kernel,
        out_shape=jax.ShapeDtypeStruct((B * S, E), x.dtype),
        in_specs=[vmem] * 4,
        out_specs=vmem,
        cost_estimate=cost,
    )(x2d, vecs, wqkv, wo)
    return out2d.reshape(B, S, E)


def reference(x, ln_w, ln_b, wq, wk, wv, bq, bk, bv, wo, bo):
    """Pure-JAX reference mirroring nn.LayerNorm + nn.MultiheadAttention (batch_first)."""
    mean = x.mean(-1, keepdims=True)
    var = ((x - mean) ** 2).mean(-1, keepdims=True)
    xn = (x - mean) / jnp.sqrt(var + EPS) * ln_w[0] + ln_b[0]
    q = xn @ wq + bq[0]
    k = xn @ wk + bk[0]
    v = xn @ wv + bv[0]
    B, S, E = x.shape
    qh = q.reshape(B, S, HEADS, HEAD_DIM).transpose(0, 2, 1, 3)
    kh = k.reshape(B, S, HEADS, HEAD_DIM).transpose(0, 2, 1, 3)
    vh = v.reshape(B, S, HEADS, HEAD_DIM).transpose(0, 2, 1, 3)
    scores = jnp.einsum("bhqd,bhkd->bhqk", qh, kh) / jnp.sqrt(HEAD_DIM)
    p = jax.nn.softmax(scores, axis=-1)
    o = jnp.einsum("bhqk,bhkd->bhqd", p, vh).transpose(0, 2, 1, 3).reshape(B, S, E)
    return o @ wo + bo[0]


if __name__ == "__main__":
    key = jax.random.PRNGKey(0)
    ks = jax.random.split(key, 8)

    x = jax.random.normal(ks[0], (BATCH, SEQ, EMBED), dtype=jnp.float32)

    # Deterministic parameter init (shapes from the module's __init__).
    # LayerNorm default init: weight=1, bias=0.
    ln_w = jnp.ones((1, EMBED), jnp.float32)
    ln_b = jnp.zeros((1, EMBED), jnp.float32)
    # in_proj_weight (3E, E) split into Wq/Wk/Wv; stored pre-transposed (E, E).
    sc = 0.1
    wq = sc * jax.random.normal(ks[1], (EMBED, EMBED), jnp.float32)
    wk = sc * jax.random.normal(ks[2], (EMBED, EMBED), jnp.float32)
    wv = sc * jax.random.normal(ks[3], (EMBED, EMBED), jnp.float32)
    bq = 0.01 * jax.random.normal(ks[4], (1, EMBED), jnp.float32)
    bk = 0.01 * jax.random.normal(ks[5], (1, EMBED), jnp.float32)
    bv = 0.01 * jax.random.normal(ks[6], (1, EMBED), jnp.float32)
    # out_proj: Linear(E, E), stored pre-transposed.
    wo = sc * jax.random.normal(ks[7], (EMBED, EMBED), jnp.float32)
    bo = jnp.zeros((1, EMBED), jnp.float32)

    # One-time parameter packing (outside the jitted per-call path).
    vecs, wqkv, wo_p = prepare_params(ln_w, ln_b, wq, wk, wv, bq, bk, bv, wo, bo)

    # TODO(synk): attention_dropout is 0 in the default config; dropout not implemented.
    out = msa_block(x, vecs, wqkv, wo_p)
    out = jax.block_until_ready(out)

    ref = reference(x, ln_w, ln_b, wq, wk, wv, bq, bk, bv, wo, bo)
    assert out.shape == (BATCH, SEQ, EMBED)
    # Tolerance covers pl.reciprocal(approx=True) in the softmax and the
    # parameter-prep scale fold (both << 1e-3).
    assert jnp.allclose(out, ref, atol=1e-3, rtol=1e-3), "mismatch vs reference"
    print("KERNEL_OK")
</pallas_src>

<mosaic_0001>
module attributes {stable_mosaic.version = 11 : i64} {
  func.func @msa_kernel(%arg0: memref<16x32xf32, #tpu.memory_space<vmem>>, %arg1: memref<4x96xf32, #tpu.memory_space<vmem>>, %arg2: memref<32x96xf32, #tpu.memory_space<vmem>>, %arg3: memref<32x32xf32, #tpu.memory_space<vmem>>, %arg4: memref<16x32xf32, #tpu.memory_space<vmem>>) attributes {dimension_semantics = [], scalar_prefetch = 0 : i64, scratch_operands = 0 : i64, tpu.core_type = #tpu.core_type<tc>} {
    %c0 = arith.constant 0 : index
    %c0_0 = arith.constant 0 : index
    %0 = vector.load %arg0[%c0, %c0_0] : memref<16x32xf32, #tpu.memory_space<vmem>>, vector<16x32xf32>
    %cst = arith.constant dense<0.000000e+00> : vector<16xf32>
    %1 = vector.multi_reduction <add>, %0, %cst [1] : vector<16x32xf32> to vector<16xf32>
    %2 = vector.shape_cast %1 : vector<16xf32> to vector<16x1xf32>
    %cst_1 = arith.constant 3.200000e+01 : f32
    %3 = vector.broadcast %cst_1 : f32 to vector<16x1xf32>
    %4 = arith.divf %2, %3 : vector<16x1xf32>
    %5 = vector.broadcast %4 : vector<16x1xf32> to vector<16x32xf32>
    %6 = arith.subf %0, %5 : vector<16x32xf32>
    %7 = arith.mulf %6, %6 : vector<16x32xf32>
    %cst_2 = arith.constant dense<0.000000e+00> : vector<16xf32>
    %8 = vector.multi_reduction <add>, %7, %cst_2 [1] : vector<16x32xf32> to vector<16xf32>
    %9 = vector.shape_cast %8 : vector<16xf32> to vector<16x1xf32>
    %cst_3 = arith.constant 3.200000e+01 : f32
    %10 = vector.broadcast %cst_3 : f32 to vector<16x1xf32>
    %11 = arith.divf %9, %10 : vector<16x1xf32>
    %12 = vector.broadcast %4 : vector<16x1xf32> to vector<16x32xf32>
    %13 = arith.subf %0, %12 : vector<16x32xf32>
    %cst_4 = arith.constant 9.99999974E-6 : f32
    %14 = vector.broadcast %cst_4 : f32 to vector<16x1xf32>
    %15 = arith.addf %11, %14 : vector<16x1xf32>
    %16 = math.rsqrt %15 : vector<16x1xf32>
    %17 = vector.broadcast %16 : vector<16x1xf32> to vector<16x32xf32>
    %18 = arith.mulf %13, %17 : vector<16x32xf32>
    %c0_5 = arith.constant 0 : index
    %c0_6 = arith.constant 0 : index
    %19 = vector.load %arg1[%c0_5, %c0_6] : memref<4x96xf32, #tpu.memory_space<vmem>>, vector<1x32xf32>
    %20 = vector.broadcast %19 : vector<1x32xf32> to vector<16x32xf32>
    %21 = arith.mulf %18, %20 : vector<16x32xf32>
    %c1 = arith.constant 1 : index
    %c0_7 = arith.constant 0 : index
    %22 = vector.load %arg1[%c1, %c0_7] : memref<4x96xf32, #tpu.memory_space<vmem>>, vector<1x32xf32>
    %23 = vector.broadcast %22 : vector<1x32xf32> to vector<16x32xf32>
    %24 = arith.addf %21, %23 : vector<16x32xf32>
    %c0_8 = arith.constant 0 : index
    %c0_9 = arith.constant 0 : index
    %25 = vector.load %arg2[%c0_8, %c0_9] : memref<32x96xf32, #tpu.memory_space<vmem>>, vector<32x96xf32>
    %cst_10 = arith.constant dense<0.000000e+00> : vector<16x96xf32>
    %26 = tpu.matmul %24, %25, %cst_10 {dimension_numbers = #tpu.dot_dimension_numbers<[1], [0], [0], [1], [0, 0, 1, 1], [], []>} : vector<16x32xf32>, vector<32x96xf32>, vector<16x96xf32> -> vector<16x96xf32>
    %c2 = arith.constant 2 : index
    %c0_11 = arith.constant 0 : index
    %27 = vector.load %arg1[%c2, %c0_11] : memref<4x96xf32, #tpu.memory_space<vmem>>, vector<1x96xf32>
    %28 = vector.broadcast %27 : vector<1x96xf32> to vector<16x96xf32>
    %29 = arith.addf %26, %28 : vector<16x96xf32>
    %30 = vector.extract_strided_slice %29 {offsets = [0, 0], sizes = [16, 8], strides = [1, 1]} : vector<16x96xf32> to vector<16x8xf32>
    %31 = vector.shape_cast %30 : vector<16x8xf32> to vector<2x8x8xf32>
    %32 = vector.extract_strided_slice %29 {offsets = [0, 32], sizes = [16, 8], strides = [1, 1]} : vector<16x96xf32> to vector<16x8xf32>
    %33 = vector.shape_cast %32 : vector<16x8xf32> to vector<2x8x8xf32>
    %34 = vector.extract_strided_slice %29 {offsets = [0, 64], sizes = [16, 8], strides = [1, 1]} : vector<16x96xf32> to vector<16x8xf32>
    %35 = vector.shape_cast %34 : vector<16x8xf32> to vector<2x8x8xf32>
    "tpu.trace_start"() <{level = 10 : i32, message = "bqd,bkd->bqk"}> : () -> ()
    %cst_12 = arith.constant dense<0.000000e+00> : vector<2x8x8xf32>
    %36 = tpu.matmul %31, %33, %cst_12 {dimension_numbers = #tpu.dot_dimension_numbers<[2], [2], [1], [1], [0, 0, 0, 1, 1, 1], [0], [0]>} : vector<2x8x8xf32>, vector<2x8x8xf32>, vector<2x8x8xf32> -> vector<2x8x8xf32>
    "tpu.trace_stop"() : () -> ()
    %cst_13 = arith.constant dense<0xFF800000> : vector<2x8xf32>
    %37 = vector.multi_reduction <maximumf>, %36, %cst_13 [2] : vector<2x8x8xf32> to vector<2x8xf32>
    %38 = vector.shape_cast %37 : vector<2x8xf32> to vector<2x8x1xf32>
    %39 = vector.broadcast %38 : vector<2x8x1xf32> to vector<2x8x8xf32>
    %40 = arith.subf %36, %39 : vector<2x8x8xf32>
    %41 = math.exp %40 : vector<2x8x8xf32>
    %cst_14 = arith.constant dense<0.000000e+00> : vector<2x8xf32>
    %42 = vector.multi_reduction <add>, %41, %cst_14 [2] : vector<2x8x8xf32> to vector<2x8xf32>
    %43 = vector.shape_cast %42 : vector<2x8xf32> to vector<2x8x1xf32>
    %44 = tpu.reciprocal %43 {approx = true} : vector<2x8x1xf32> -> vector<2x8x1xf32>
    %45 = vector.broadcast %44 : vector<2x8x1xf32> to vector<2x8x8xf32>
    %46 = arith.mulf %41, %45 : vector<2x8x8xf32>
    "tpu.trace_start"() <{level = 10 : i32, message = "bqk,bkd->bqd"}> : () -> ()
    %cst_15 = arith.constant dense<0.000000e+00> : vector<2x8x8xf32>
    %47 = tpu.matmul %46, %35, %cst_15 {dimension_numbers = #tpu.dot_dimension_numbers<[2], [1], [1], [2], [0, 0, 0, 1, 1, 2], [0], [0]>} : vector<2x8x8xf32>, vector<2x8x8xf32>, vector<2x8x8xf32> -> vector<2x8x8xf32>
    "tpu.trace_stop"() : () -> ()
    %48 = vector.shape_cast %47 : vector<2x8x8xf32> to vector<16x8xf32>
    %49 = vector.extract_strided_slice %29 {offsets = [0, 8], sizes = [16, 8], strides = [1, 1]} : vector<16x96xf32> to vector<16x8xf32>
    %50 = vector.shape_cast %49 : vector<16x8xf32> to vector<2x8x8xf32>
    %51 = vector.extract_strided_slice %29 {offsets = [0, 40], sizes = [16, 8], strides = [1, 1]} : vector<16x96xf32> to vector<16x8xf32>
    %52 = vector.shape_cast %51 : vector<16x8xf32> to vector<2x8x8xf32>
    %53 = vector.extract_strided_slice %29 {offsets = [0, 72], sizes = [16, 8], strides = [1, 1]} : vector<16x96xf32> to vector<16x8xf32>
    %54 = vector.shape_cast %53 : vector<16x8xf32> to vector<2x8x8xf32>
    "tpu.trace_start"() <{level = 10 : i32, message = "bqd,bkd->bqk"}> : () -> ()
    %cst_16 = arith.constant dense<0.000000e+00> : vector<2x8x8xf32>
    %55 = tpu.matmul %50, %52, %cst_16 {dimension_numbers = #tpu.dot_dimension_numbers<[2], [2], [1], [1], [0, 0, 0, 1, 1, 1], [0], [0]>} : vector<2x8x8xf32>, vector<2x8x8xf32>, vector<2x8x8xf32> -> vector<2x8x8xf32>
    "tpu.trace_stop"() : () -> ()
    %cst_17 = arith.constant dense<0xFF800000> : vector<2x8xf32>
    %56 = vector.multi_reduction <maximumf>, %55, %cst_17 [2] : vector<2x8x8xf32> to vector<2x8xf32>
    %57 = vector.shape_cast %56 : vector<2x8xf32> to vector<2x8x1xf32>
    %58 = vector.broadcast %57 : vector<2x8x1xf32> to vector<2x8x8xf32>
    %59 = arith.subf %55, %58 : vector<2x8x8xf32>
    %60 = math.exp %59 : vector<2x8x8xf32>
    %cst_18 = arith.constant dense<0.000000e+00> : vector<2x8xf32>
    %61 = vector.multi_reduction <add>, %60, %cst_18 [2] : vector<2x8x8xf32> to vector<2x8xf32>
    %62 = vector.shape_cast %61 : vector<2x8xf32> to vector<2x8x1xf32>
    %63 = tpu.reciprocal %62 {approx = true} : vector<2x8x1xf32> -> vector<2x8x1xf32>
    %64 = vector.broadcast %63 : vector<2x8x1xf32> to vector<2x8x8xf32>
    %65 = arith.mulf %60, %64 : vector<2x8x8xf32>
    "tpu.trace_start"() <{level = 10 : i32, message = "bqk,bkd->bqd"}> : () -> ()
    %cst_19 = arith.constant dense<0.000000e+00> : vector<2x8x8xf32>
    %66 = tpu.matmul %65, %54, %cst_19 {dimension_numbers = #tpu.dot_dimension_numbers<[2], [1], [1], [2], [0, 0, 0, 1, 1, 2], [0], [0]>} : vector<2x8x8xf32>, vector<2x8x8xf32>, vector<2x8x8xf32> -> vector<2x8x8xf32>
    "tpu.trace_stop"() : () -> ()
    %67 = vector.shape_cast %66 : vector<2x8x8xf32> to vector<16x8xf32>
    %68 = vector.extract_strided_slice %29 {offsets = [0, 16], sizes = [16, 8], strides = [1, 1]} : vector<16x96xf32> to vector<16x8xf32>
    %69 = vector.shape_cast %68 : vector<16x8xf32> to vector<2x8x8xf32>
    %70 = vector.extract_strided_slice %29 {offsets = [0, 48], sizes = [16, 8], strides = [1, 1]} : vector<16x96xf32> to vector<16x8xf32>
    %71 = vector.shape_cast %70 : vector<16x8xf32> to vector<2x8x8xf32>
    %72 = vector.extract_strided_slice %29 {offsets = [0, 80], sizes = [16, 8], strides = [1, 1]} : vector<16x96xf32> to vector<16x8xf32>
    %73 = vector.shape_cast %72 : vector<16x8xf32> to vector<2x8x8xf32>
    "tpu.trace_start"() <{level = 10 : i32, message = "bqd,bkd->bqk"}> : () -> ()
    %cst_20 = arith.constant dense<0.000000e+00> : vector<2x8x8xf32>
    %74 = tpu.matmul %69, %71, %cst_20 {dimension_numbers = #tpu.dot_dimension_numbers<[2], [2], [1], [1], [0, 0, 0, 1, 1, 1], [0], [0]>} : vector<2x8x8xf32>, vector<2x8x8xf32>, vector<2x8x8xf32> -> vector<2x8x8xf32>
    "tpu.trace_stop"() : () -> ()
    %cst_21 = arith.constant dense<0xFF800000> : vector<2x8xf32>
    %75 = vector.multi_reduction <maximumf>, %74, %cst_21 [2] : vector<2x8x8xf32> to vector<2x8xf32>
    %76 = vector.shape_cast %75 : vector<2x8xf32> to vector<2x8x1xf32>
    %77 = vector.broadcast %76 : vector<2x8x1xf32> to vector<2x8x8xf32>
    %78 = arith.subf %74, %77 : vector<2x8x8xf32>
    %79 = math.exp %78 : vector<2x8x8xf32>
    %cst_22 = arith.constant dense<0.000000e+00> : vector<2x8xf32>
    %80 = vector.multi_reduction <add>, %79, %cst_22 [2] : vector<2x8x8xf32> to vector<2x8xf32>
    %81 = vector.shape_cast %80 : vector<2x8xf32> to vector<2x8x1xf32>
    %82 = tpu.reciprocal %81 {approx = true} : vector<2x8x1xf32> -> vector<2x8x1xf32>
    %83 = vector.broadcast %82 : vector<2x8x1xf32> to vector<2x8x8xf32>
    %84 = arith.mulf %79, %83 : vector<2x8x8xf32>
    "tpu.trace_start"() <{level = 10 : i32, message = "bqk,bkd->bqd"}> : () -> ()
    %cst_23 = arith.constant dense<0.000000e+00> : vector<2x8x8xf32>
    %85 = tpu.matmul %84, %73, %cst_23 {dimension_numbers = #tpu.dot_dimension_numbers<[2], [1], [1], [2], [0, 0, 0, 1, 1, 2], [0], [0]>} : vector<2x8x8xf32>, vector<2x8x8xf32>, vector<2x8x8xf32> -> vector<2x8x8xf32>
    "tpu.trace_stop"() : () -> ()
    %86 = vector.shape_cast %85 : vector<2x8x8xf32> to vector<16x8xf32>
    %87 = vector.extract_strided_slice %29 {offsets = [0, 24], sizes = [16, 8], strides = [1, 1]} : vector<16x96xf32> to vector<16x8xf32>
    %88 = vector.shape_cast %87 : vector<16x8xf32> to vector<2x8x8xf32>
    %89 = vector.extract_strided_slice %29 {offsets = [0, 56], sizes = [16, 8], strides = [1, 1]} : vector<16x96xf32> to vector<16x8xf32>
    %90 = vector.shape_cast %89 : vector<16x8xf32> to vector<2x8x8xf32>
    %91 = vector.extract_strided_slice %29 {offsets = [0, 88], sizes = [16, 8], strides = [1, 1]} : vector<16x96xf32> to vector<16x8xf32>
    %92 = vector.shape_cast %91 : vector<16x8xf32> to vector<2x8x8xf32>
    "tpu.trace_start"() <{level = 10 : i32, message = "bqd,bkd->bqk"}> : () -> ()
    %cst_24 = arith.constant dense<0.000000e+00> : vector<2x8x8xf32>
    %93 = tpu.matmul %88, %90, %cst_24 {dimension_numbers = #tpu.dot_dimension_numbers<[2], [2], [1], [1], [0, 0, 0, 1, 1, 1], [0], [0]>} : vector<2x8x8xf32>, vector<2x8x8xf32>, vector<2x8x8xf32> -> vector<2x8x8xf32>
    "tpu.trace_stop"() : () -> ()
    %cst_25 = arith.constant dense<0xFF800000> : vector<2x8xf32>
    %94 = vector.multi_reduction <maximumf>, %93, %cst_25 [2] : vector<2x8x8xf32> to vector<2x8xf32>
    %95 = vector.shape_cast %94 : vector<2x8xf32> to vector<2x8x1xf32>
    %96 = vector.broadcast %95 : vector<2x8x1xf32> to vector<2x8x8xf32>
    %97 = arith.subf %93, %96 : vector<2x8x8xf32>
    %98 = math.exp %97 : vector<2x8x8xf32>
    %cst_26 = arith.constant dense<0.000000e+00> : vector<2x8xf32>
    %99 = vector.multi_reduction <add>, %98, %cst_26 [2] : vector<2x8x8xf32> to vector<2x8xf32>
    %100 = vector.shape_cast %99 : vector<2x8xf32> to vector<2x8x1xf32>
    %101 = tpu.reciprocal %100 {approx = true} : vector<2x8x1xf32> -> vector<2x8x1xf32>
    %102 = vector.broadcast %101 : vector<2x8x1xf32> to vector<2x8x8xf32>
    %103 = arith.mulf %98, %102 : vector<2x8x8xf32>
    "tpu.trace_start"() <{level = 10 : i32, message = "bqk,bkd->bqd"}> : () -> ()
    %cst_27 = arith.constant dense<0.000000e+00> : vector<2x8x8xf32>
    %104 = tpu.matmul %103, %92, %cst_27 {dimension_numbers = #tpu.dot_dimension_numbers<[2], [1], [1], [2], [0, 0, 0, 1, 1, 2], [0], [0]>} : vector<2x8x8xf32>, vector<2x8x8xf32>, vector<2x8x8xf32> -> vector<2x8x8xf32>
    "tpu.trace_stop"() : () -> ()
    %105 = vector.shape_cast %104 : vector<2x8x8xf32> to vector<16x8xf32>
    %106 = tpu.concatenate %48, %67, %86, %105 in 1 : vector<16x8xf32>, vector<16x8xf32>, vector<16x8xf32>, vector<16x8xf32> -> vector<16x32xf32>
    %c0_28 = arith.constant 0 : index
    %c0_29 = arith.constant 0 : index
    %107 = vector.load %arg3[%c0_28, %c0_29] : memref<32x32xf32, #tpu.memory_space<vmem>>, vector<32x32xf32>
    %cst_30 = arith.constant dense<0.000000e+00> : vector<16x32xf32>
    %108 = tpu.matmul %106, %107, %cst_30 {dimension_numbers = #tpu.dot_dimension_numbers<[1], [0], [0], [1], [0, 0, 1, 1], [], []>} : vector<16x32xf32>, vector<32x32xf32>, vector<16x32xf32> -> vector<16x32xf32>
    %c3 = arith.constant 3 : index
    %c0_31 = arith.constant 0 : index
    %109 = vector.load %arg1[%c3, %c0_31] : memref<4x96xf32, #tpu.memory_space<vmem>>, vector<1x32xf32>
    %110 = vector.broadcast %109 : vector<1x32xf32> to vector<16x32xf32>
    %111 = arith.addf %108, %110 : vector<16x32xf32>
    %c0_32 = arith.constant 0 : index
    %c0_33 = arith.constant 0 : index
    %112 = vector.load %arg4[%c0_32, %c0_33] : memref<16x32xf32, #tpu.memory_space<vmem>>, vector<16x32xf32>
    tpu.vector_store %arg4[%c0_32, %c0_33], %111 {strides = array<i32>} : memref<16x32xf32, #tpu.memory_space<vmem>>, vector<16x32xf32>,
    return
  }
}

</mosaic_0001>

<bundles_post_ra>
// kernel: msa_block.1
= control target key start
LH: loop header
LB: loop body
LE: loop exit
PB: predicated region body
PF: predicated region fallthrough
CT: control target
= control target key end

     0   :  { %9 = vsyncpa [#allocation3], 0  ;;  %s2227_s0 = inlined_call_operand.hbm [shape: f32[16,32], index: 0, kind: input, shape index: {}]   ;;  %s2228_s1 = inlined_call_operand.hbm [shape: f32[4,96], index: 1, kind: input, shape index: {}]   ;;  %s2229_s2 = inlined_call_operand.hbm [shape: f32[32,96], index: 2, kind: input, shape index: {}]   ;;  %s2230_s3 = inlined_call_operand.hbm [shape: f32[32,32], index: 3, kind: input, shape index: {}]   ;;  %s2231_s4 = inlined_call_operand.hbm [shape: f32[16,32], index: 4, kind: output, shape index: {}]  }
   0x1   :  { %10 = vsyncpa [#allocation6], 0 }
   0x2   :  { %11 = vsyncpa [#allocation9], 0 }
   0x3   :  { %12 = vsyncpa [#allocation4], 0  ;;  %s2011_s15 = smov [#allocation5]   ;;  %s2012_s17 = smov [#allocation2]  }
   0x4   :  { %s31_s16 = sshll.u32 %s2011_s15, 4  ;;  %s18_s18 = sshll.u32 %s2012_s17, 4  ;;  %s32_s16 = int_to_ptr.vmem [resolvable:$true] %s31_s16  ;;  %s19_s18 = int_to_ptr.vmem [resolvable:$true] %s18_s18 }
   0x5   :  { %s1911_s19 = scalar_lea.vmem %s32_s16, 64  ;;  %p1916_p1 = scmp.lt.s32.totalorder %s32_s16, %s32_s16 }
   0x6   :  { %p1912_p0 = scmp.ne.s32.totalorder %s32_s16, %s1911_s19  ;;  %p1917_p2 = scmp.lt.s32.totalorder %s1911_s19, %s1911_s19 }
   0x8   :  { %p1918_p3 = por %p1917_p2, %p1916_p1 }
   0xa   :  { %p1919_p4 = pnand %p1918_p3, %p1912_p0 }
   0xc   :  { %1922 = shalt.err (!%p1919_p4)
}
   0xd   :  { %34 = dma.hbm_to_vmem [thread:$0]  %s2228_s1, 64, %s32_s16, [#allocation6]  }
   0xe   :  { %s1931_s22 = scalar_lea.vmem %s19_s18, 256  ;;  %p1936_p6 = scmp.lt.s32.totalorder %s19_s18, %s19_s18 }
   0xf   :  { %p1932_p5 = scmp.ne.s32.totalorder %s19_s18, %s1931_s22  ;;  %p1937_p7 = scmp.lt.s32.totalorder %s1931_s22, %s1931_s22 }
  0x11   :  { %p1938_p8 = por %p1937_p7, %p1936_p6 }
  0x13   :  { %p1939_p9 = pnand %p1938_p8, %p1932_p5 }
  0x15   :  { %1942 = shalt.err (!%p1939_p9)
}
  0x16   :  { %s2013_s23 = smov 128   ;;  %s2014_s24 = smov 8  }
  0x17   :  { %24 = dma.hbm_to_vmem [thread:$0]  %s2227_s0, 256, %s19_s18, [#allocation3], %s2013_s23, %s2013_s23, %s2014_s24  }
  0x18   :  { %s2015_s27 = smov [#allocation7]   ;;  %s2016_s29 = smov [#allocation8]  }
  0x19   :  { %s40_s28 = sshll.u32 %s2015_s27, 4  ;;  %s52_s1 = sshll.u32 %s2016_s29, 4  ;;  %s41_s28 = int_to_ptr.vmem [resolvable:$true] %s40_s28  ;;  %s53_s1 = int_to_ptr.vmem [resolvable:$true] %s52_s1 }
  0x1a   :  { %s1951_s30 = scalar_lea.vmem %s41_s28, 512  ;;  %p1956_p11 = scmp.lt.s32.totalorder %s41_s28, %s41_s28 }
  0x1b   :  { %p1952_p10 = scmp.ne.s32.totalorder %s41_s28, %s1951_s30  ;;  %p1957_p12 = scmp.lt.s32.totalorder %s1951_s30, %s1951_s30 }
  0x1d   :  { %p1958_p13 = por %p1957_p12, %p1956_p11 }
  0x1f   :  { %p1959_p0 = pnand %p1958_p13, %p1952_p10 }
  0x21   :  { %1962 = shalt.err (!%p1959_p0)
}
  0x22   :  { %46 = dma.hbm_to_vmem [thread:$0]  %s2229_s2, 512, %s41_s28, [#allocation6], %s2013_s23, %s2013_s23, %s2014_s24  }
  0x23   :  { %s1971_s0 = scalar_lea.vmem %s53_s1, 512  ;;  %p1976_p2 = scmp.lt.s32.totalorder %s53_s1, %s53_s1 }
  0x24   :  { %p1972_p1 = scmp.ne.s32.totalorder %s53_s1, %s1971_s0  ;;  %p1977_p3 = scmp.lt.s32.totalorder %s1971_s0, %s1971_s0 }
  0x26   :  { %p1978_p4 = por %p1977_p3, %p1976_p2 }
  0x28   :  { %p1979_p5 = pnand %p1978_p4, %p1972_p1 }
  0x2a   :  { %1982 = shalt.err (!%p1979_p5)
}
  0x2b   :  { %58 = dma.hbm_to_vmem [thread:$0]  %s2230_s3, 512, %s53_s1, [#allocation9], %s2013_s23, %s2013_s23, %s2014_s24  }
  0x2c   :  { %2003 = dma.done.wait [#allocation3], 256  }
  0x2d   :  { %2004 = vsyncadd [#allocation3], 4294967040 }
  0x2e   :  { %2005 = dma.done.wait [#allocation6], 576  }
  0x2f   :  { %2006 = vsyncadd [#allocation6], 4294966720 }
  0x30   :  { %2007 = dma.done.wait [#allocation9], 512  }
  0x31   :  { %2008 = vsyncadd [#allocation9], 4294966784  ;;  %vm73_vm0 = vcmask 261120   ;;  %v71_v0 = vld [vmem:[#allocation2] sm:$0xff]  ;;  %v72_v1 = vld [vmem:[#allocation2 + $0x8] sm:$0xff]  ;;  %v2017_v34 = vmov 0.0  }
  0x32   :  { %v74_v2 = vsel %vm73_vm0, %v71_v0, 0.0  ;;  %v77_v3 = vsel %vm73_vm0, %v72_v1, 0.0  ;;  %v118_v14 = vld [vmem:[#allocation7 + $0x18] sm:$0xff]  ;;  %v117_v15 = vld [vmem:[#allocation7 + $0x10] sm:$0xff]  ;;  %v116_v16 = vld [vmem:[#allocation7 + $0x8] sm:$0xff]  ;;  %1754 = vmatprep.subr.mxu1 %v2017_v34  ;;  %vm2018_vm1 = vmmov 0  }
  0x33   :  { %75 = vadd.xlane.f32.xlu0 %v74_v2  ;;  %1743 = vmatprep.subr.mxu0 %v118_v14  ;;  %v115_v17 = vld [vmem:[#allocation7] sm:$0xff]  ;;  %v1667_v25 = vld [vmem:[#allocation5] ss:$0 sm:$0xff]  ;;  %v1668_v27 = vld [vmem:[#allocation5 + $0x1] ss:$0 sm:$0xff]  ;;  %s2019_s2 = smov 96  }
  0x34   :  { %1744 = vmatpush3.msra.mxu0 %v118_v14  ;;  %1756 = vmatprep.mubr.msk.f32.mxu1 %vm2018_vm1, %v2017_v34  ;;  %v1669_v35 = vld [vmem:[#allocation5 + $0x2] ss:$0 sm:$0xff]  ;;  %vm208_vm2 = vcmask 64512   ;;  %s2020_s3 = smov 64   ;;  %s2021_s9 = smov 88   ;;  %vm1553_vm3 = vcmask 195584  }
  0x35   :  { %1745 = vmatprep.subr.mxu0 %v117_v15  ;;  %s2022_s10 = smov 120   ;;  %s2023_s11 = smov 56   ;;  %vm1550_vm4 = vcmask 130048  }
  0x36   :  { %1746 = vmatpush3.msra.mxu0 %v117_v15  ;;  %s2024_s12 = smov 80   ;;  %s2025_s13 = smov 112  }
  0x37   :  { %78 = vadd.xlane.f32.xlu0 %v77_v3  ;;  %1747 = vmatprep.subr.mxu0 %v116_v16  ;;  %s2026_s14 = smov 48   ;;  %s2027_s15 = smov 72  }
  0x38   :  { %1748 = vmatpush3.msra.mxu0 %v116_v16  ;;  %s2028_s16 = smov 104   ;;  %s2029_s17 = smov 40  }
  0x39   :  { %1749 = vmatprep.subr.mxu0 %v115_v17  ;;  %s2030_s18 = smov 16   ;;  %s2031_s19 = smov 24  }
  0x3a   :  { %1750 = vmatpush3.msra.mxu0 %v115_v17  ;;  %s2032_s20 = smov [#allocation10]  }
  0x3b   :  { %1774 = vmatprep.subr.mxu0 %v2017_v34  ;;  %s1653_s21 = sshll.u32 %s2032_s20, 4  ;;  %s1654_s21 = int_to_ptr.vmem [resolvable:$true] %s1653_s21 }
  0x3c   :  { %s1983_s22 = scalar_lea.vmem %s1654_s21, 256  ;;  %p1988_p7 = scmp.lt.s32.totalorder %s1654_s21, %s1654_s21 }
  0x3d   :  { %p1984_p6 = scmp.ne.s32.totalorder %s1654_s21, %s1983_s22  ;;  %p1989_p8 = scmp.lt.s32.totalorder %s1983_s22, %s1983_s22 }
  0x3f   :  { %p1990_p9 = por %p1989_p8, %p1988_p7 }
  0x41   :  { %p1991_p10 = pnand %p1990_p9, %p1984_p6 }
  0xbc   :  { %v76_v4 = vpop.xlane.xlu0 %75 }
  0xbd   :  { %v81_v5 = vmul.f32 0.03125, %v76_v4 }
  0xbf   :  { %v83_v6 = vsub.f32 %v71_v0, %v81_v5 }
  0xc0   :  { %v79_v7 = vpop.xlane.xlu0 %78 }
  0xc1   :  { %v82_v8 = vmul.f32 0.03125, %v79_v7  ;;  %v85_v9 = vmul.f32 %v83_v6, %v83_v6 }
  0xc3   :  { %v84_v10 = vsub.f32 %v72_v1, %v82_v8  ;;  %v87_v11 = vsel %vm73_vm0, %v85_v9, 0.0 }
  0xc4   :  { %88 = vadd.xlane.f32.xlu1 %v87_v11 }
  0xc5   :  { %v86_v12 = vmul.f32 %v84_v10, %v84_v10 }
  0xc7   :  { %v90_v13 = vsel %vm73_vm0, %v86_v12, 0.0 }
  0xc8   :  { %91 = vadd.xlane.f32.xlu1 %v90_v13 }
 0x14d   :  { %v89_v18 = vpop.xlane.xlu1 %88 }
 0x14e   :  { %v93_v19 = vmul.f32 0.03125, %v89_v18 }
 0x150   :  { %v95_v20 = vadd.f32 1e-05, %v93_v19 }
 0x151   :  { %v92_v21 = vpop.xlane.xlu1 %91 }
 0x152   :  { %1867 = vrsqrt.f32 %v95_v20  ;;  %v94_v22 = vmul.f32 0.03125, %v92_v21 }
 0x154   :  { %v96_v23 = vadd.f32 1e-05, %v94_v22 }
 0x156   :  { %1869 = vrsqrt.f32 %v96_v23 }
 0x15f   :  { %v1868_v24 = vpop.eup %1867 }
 0x160   :  { %v99_v26 = vmul.f32 %v1868_v24, %v83_v6 }
 0x162   :  { %v106_v28 = vmul.f32 %v1667_v25, %v99_v26 }
 0x163   :  { %v1870_v29 = vpop.eup %1869 }
 0x164   :  { %v100_v30 = vmul.f32 %v1870_v29, %v84_v10  ;;  %v113_v31 = vadd.f32 %v1668_v27, %v106_v28 }
 0x166   :  { %v107_v32 = vmul.f32 %v1667_v25, %v100_v30  ;;  %1751 = vmatprep.mubr.msk.f32.mxu0 %vm73_vm0, %v113_v31 }
 0x168   :  { %v114_v33 = vadd.f32 %v1668_v27, %v107_v32 }
 0x16a   :  { %1752 = vmatmul.mubr.msk.f32.vlgmr.msra.gmra.mxu0 %vm73_vm0, %v114_v33 }
 0x16b   :  { %1776 = vmatprep.mubr.msk.f32.mxu0 %vm2018_vm1, %v2017_v34 }
 0x22a   :  { %v1753_v36 = vpop.f32.mrf.mxu0 }
 0x22b   :  { %v2091_v37 = vadd.f32 %v1753_v36, %v1669_v35 }
 0x22c   :  { %v196_v38 = vpop.f32.mrf.mxu0 }
 0x22d   :  { %v2093_v39 = vadd.f32 %v1669_v35, %v196_v38  ;;  %284 = vrot.lane.b32.xlu1 %v2091_v37, %s2019_s2 }
 0x22f   :  { %206 = vrot.lane.b32.xlu0 %v2093_v39, %s2019_s2 }
 0x29f   :  { %v285_v41 = vpop.permute.xlu1 %284 }
 0x2a1   :  { %v207_v40 = vpop.permute.xlu0 %206 }
 0x2a2   :  { %1755 = vmatpush3.xpose.msk.msra.mxu1 %vm208_vm2, %v207_v40 }
 0x2a3   :  { %1759 = vmatprep.subr.mxu1 %v2017_v34 }
 0x2a5   :  { %1757 = vmatmul.mubr.msk.f32.vlgmr.msra.gmra.mxu1 %vm208_vm2, %v2093_v39 }
 0x2a6   :  { %1760 = vmatpush3.xpose.msk.msra.mxu1 %vm208_vm2, %v285_v41  ;;  %1761 = vmatprep.mubr.msk.f32.mxu1 %vm2018_vm1, %v2017_v34 }
 0x2a7   :  { %1764 = vmatprep.subr.mxu1 %v2017_v34 }
 0x2a9   :  { %1762 = vmatmul.mubr.msk.f32.vlgmr.msra.gmra.mxu1 %vm208_vm2, %v2091_v37 }
 0x2aa   :  { %1766 = vmatprep.mubr.msk.f32.mxu1 %vm2018_vm1, %v2017_v34 }
 0x365   :  { %v279_v42 = vpop.f32.mrf.mxu1 }
 0x366   :  { %v360_v43 = vsel %vm208_vm2, %v279_v42, -inf }
 0x367   :  { %361 = vmax.xlane.f32.xlu1 %v360_v43  ;;  %v1758_v44 = vpop.f32.mrf.mxu1 }
 0x369   :  { %v356_v45 = vpop.f32.mrf.mxu1 }
 0x36a   :  { %v363_v46 = vsel %vm208_vm2, %v356_v45, -inf }
 0x36b   :  { %364 = vmax.xlane.f32.xlu0 %v363_v46  ;;  %v1763_v47 = vpop.f32.mrf.mxu1 }
 0x378   :  { %458 = vrot.lane.b32.xlu1 %v2091_v37, %s2020_s3 }
 0x37c   :  { %536 = vrot.lane.b32.xlu1 %v2093_v39, %s2021_s9 }
 0x380   :  { %614 = vrot.lane.b32.xlu1 %v2091_v37, %s2021_s9 }
 0x3f0   :  { %v362_v48 = vpop.xlane.xlu1 %361 }
 0x3f1   :  { %v366_v49 = vsub.f32 %v279_v42, %v362_v48 }
 0x3f3   :  { %v368_v50 = vmul.f32 1.442695, %v366_v49 }
 0x3f4   :  { %v459_v51 = vpop.permute.xlu1 %458  ;;  %v365_v52 = vpop.xlane.xlu0 %364 }
 0x3f5   :  { %1871 = vpow2.f32 %v368_v50  ;;  %v367_v53 = vsub.f32 %v356_v45, %v365_v52 }
 0x3f7   :  { %v370_v54 = vmul.f32 1.442695, %v367_v53 }
 0x3f8   :  { %v537_v55 = vpop.permute.xlu1 %536 }
 0x3f9   :  { %1873 = vpow2.f32 %v370_v54  ;;  %1775 = vmatpush3.xpose.msk.msra.mxu0 %vm208_vm2, %v537_v55 }
 0x3fa   :  { %1784 = vmatprep.subr.mxu0 %v2017_v34 }
 0x3fc   :  { %v615_v60 = vpop.permute.xlu1 %614 }
 0x402   :  { %v1872_v56 = vpop.eup %1871 }
 0x403   :  { %v372_v57 = vsel %vm208_vm2, %v1872_v56, 0.0 }
 0x404   :  { %373 = vadd.xlane.f32.xlu0 %v372_v57 }
 0x406   :  { %v1874_v58 = vpop.eup %1873 }
 0x407   :  { %v375_v59 = vsel %vm208_vm2, %v1874_v58, 0.0 }
 0x408   :  { %376 = vadd.xlane.f32.xlu1 %v375_v59 }
 0x419   :  { %612 = vrot.lane.b32.xlu1 %v2091_v37, %s2022_s10 }
 0x41a   :  { %382 = vrot.lane.b32.xlu0 %v2093_v39, %s2020_s3 }
 0x41e   :  { %534 = vrot.lane.b32.xlu0 %v2093_v39, %s2022_s10 }
 0x48d   :  { %v374_v61 = vpop.xlane.xlu0 %373 }
 0x48e   :  { %1875 = vrcp.f32 %v374_v61 }
 0x491   :  { %v377_v62 = vpop.xlane.xlu1 %376  ;;  %v383_v63 = vpop.permute.xlu0 %382 }
 0x492   :  { %1877 = vrcp.f32 %v377_v62  ;;  %1765 = vmatpush3.msra.mxu1 %v383_v63 }
 0x493   :  { %1769 = vmatprep.subr.mxu1 %v2017_v34 }
 0x495   :  { %v535_v0 = vpop.permute.xlu0 %534  ;;  %v613_v5 = vpop.permute.xlu1 %612 }
 0x496   :  { %1777 = vmatmul.mubr.msk.f32.vlgmr.msra.gmra.mxu0 %vm208_vm2, %v535_v0 }
 0x497   :  { %1786 = vmatprep.mubr.msk.f32.mxu0 %vm2018_vm1, %v2017_v34 }
 0x49b   :  { %v1876_v1 = vpop.eup %1875 }
 0x49c   :  { %v380_v2 = vmul.f32 %v1876_v1, %v1872_v56 }
 0x49e   :  { %1767 = vmatmul.mubr.msk.f32.vlgmr.msra.gmra.mxu1 %vm208_vm2, %v380_v2 }
 0x49f   :  { %v1878_v3 = vpop.eup %1877  ;;  %1770 = vmatpush3.msra.mxu1 %v459_v51  ;;  %1771 = vmatprep.mubr.msk.f32.mxu1 %vm2018_vm1, %v2017_v34 }
 0x4a0   :  { %1779 = vmatprep.subr.mxu1 %v2017_v34  ;;  %v381_v4 = vmul.f32 %v1878_v3, %v1874_v58 }
 0x4a2   :  { %1772 = vmatmul.mubr.msk.f32.vlgmr.msra.gmra.mxu1 %vm208_vm2, %v381_v4 }
 0x4a3   :  { %1780 = vmatpush3.xpose.msk.msra.mxu1 %vm208_vm2, %v615_v60  ;;  %1781 = vmatprep.mubr.msk.f32.mxu1 %vm2018_vm1, %v2017_v34 }
 0x4a4   :  { %1789 = vmatprep.subr.mxu1 %v2017_v34 }
 0x4a6   :  { %1782 = vmatmul.mubr.msk.f32.vlgmr.msra.gmra.mxu1 %vm208_vm2, %v613_v5 }
 0x4a7   :  { %1791 = vmatprep.mubr.msk.f32.mxu1 %vm2018_vm1, %v2017_v34 }
 0x556   :  { %v608_v6 = vpop.f32.mrf.mxu0 }
 0x557   :  { %v690_v7 = vsel %vm208_vm2, %v608_v6, -inf }
 0x558   :  { %691 = vmax.xlane.f32.xlu0 %v690_v7  ;;  %v1778_v8 = vpop.f32.mrf.mxu0 }
 0x55e   :  { %v2138_v9 = vpop.f32.mrf.mxu1 }
 0x560   :  { %v1768_v10 = vpop.f32.mrf.mxu1 }
 0x562   :  { %v2140_v11 = vpop.f32.mrf.mxu1 }
 0x564   :  { %v1773_v12 = vpop.f32.mrf.mxu1 }
 0x566   :  { %v686_v13 = vpop.f32.mrf.mxu1 }
 0x567   :  { %v693_v14 = vsel %vm208_vm2, %v686_v13, -inf }
 0x568   :  { %694 = vmax.xlane.f32.xlu1 %v693_v14  ;;  %v1783_v15 = vpop.f32.mrf.mxu1 }
 0x579   :  { %788 = vrot.lane.b32.xlu1 %v2091_v37, %s2023_s11 }
 0x57d   :  { %866 = vrot.lane.b32.xlu1 %v2093_v39, %s2024_s12 }
 0x581   :  { %944 = vrot.lane.b32.xlu1 %v2091_v37, %s2024_s12 }
 0x585   :  { %942 = vrot.lane.b32.xlu1 %v2091_v37, %s2025_s13 }
 0x5e1   :  { %v692_v16 = vpop.xlane.xlu0 %691 }
 0x5e2   :  { %v696_v17 = vsub.f32 %v608_v6, %v692_v16 }
 0x5e4   :  { %v698_v18 = vmul.f32 1.442695, %v696_v17 }
 0x5e6   :  { %1879 = vpow2.f32 %v698_v18 }
 0x5f1   :  { %v695_v19 = vpop.xlane.xlu1 %694 }
 0x5f2   :  { %v697_v23 = vsub.f32 %v686_v13, %v695_v19 }
 0x5f3   :  { %v1880_v20 = vpop.eup %1879 }
 0x5f4   :  { %v702_v21 = vsel %vm208_vm2, %v1880_v20, 0.0  ;;  %v700_v24 = vmul.f32 1.442695, %v697_v23 }
 0x5f5   :  { %703 = vadd.xlane.f32.xlu0 %v702_v21  ;;  %v789_v22 = vpop.permute.xlu1 %788 }
 0x5f6   :  { %1790 = vmatpush3.msra.mxu1 %v789_v22  ;;  %1881 = vpow2.f32 %v700_v24 }
 0x5f7   :  { %1799 = vmatprep.subr.mxu1 %v2017_v34 }
 0x5f9   :  { %v867_v31 = vpop.permute.xlu1 %866 }
 0x5fd   :  { %v945_v36 = vpop.permute.xlu1 %944 }
 0x601   :  { %v943_v40 = vpop.permute.xlu1 %942 }
 0x603   :  { %v1882_v25 = vpop.eup %1881 }
 0x604   :  { %v705_v26 = vsel %vm208_vm2, %v1882_v25, 0.0 }
 0x60b   :  { %712 = vrot.lane.b32.xlu0 %v2093_v39, %s2023_s11 }
 0x62a   :  { %706 = vadd.xlane.f32.xlu0 %v705_v26 }
 0x640   :  { %864 = vrot.lane.b32.xlu0 %v2093_v39, %s2025_s13 }
 0x67e   :  { %v704_v27 = vpop.xlane.xlu0 %703 }
 0x67f   :  { %1883 = vrcp.f32 %v704_v27 }
 0x682   :  { %v713_v28 = vpop.permute.xlu0 %712 }
 0x683   :  { %1785 = vmatpush3.msra.mxu0 %v713_v28 }
 0x684   :  { %1794 = vmatprep.subr.mxu0 %v2017_v34 }
 0x68c   :  { %v1884_v29 = vpop.eup %1883 }
 0x68d   :  { %v710_v30 = vmul.f32 %v1884_v29, %v1880_v20 }
 0x68f   :  { %1787 = vmatmul.mubr.msk.f32.vlgmr.msra.gmra.mxu0 %vm208_vm2, %v710_v30 }
 0x690   :  { %1795 = vmatpush3.xpose.msk.msra.mxu0 %vm208_vm2, %v867_v31  ;;  %1796 = vmatprep.mubr.msk.f32.mxu0 %vm2018_vm1, %v2017_v34 }
 0x691   :  { %1804 = vmatprep.subr.mxu0 %v2017_v34 }
 0x6b3   :  { %v707_v32 = vpop.xlane.xlu0 %706 }
 0x6b4   :  { %1885 = vrcp.f32 %v707_v32 }
 0x6b7   :  { %v865_v33 = vpop.permute.xlu0 %864 }
 0x6b8   :  { %1797 = vmatmul.mubr.msk.f32.vlgmr.msra.gmra.mxu0 %vm208_vm2, %v865_v33 }
 0x6b9   :  { %1806 = vmatprep.mubr.msk.f32.mxu0 %vm2018_vm1, %v2017_v34 }
 0x6c1   :  { %v1886_v35 = vpop.eup %1885 }
 0x6c2   :  { %v711_v38 = vmul.f32 %v1886_v35, %v1882_v25 }
 0x6c4   :  { %1792 = vmatmul.mubr.msk.f32.vlgmr.msra.gmra.mxu1 %vm208_vm2, %v711_v38 }
 0x6c5   :  { %1800 = vmatpush3.xpose.msk.msra.mxu1 %vm208_vm2, %v945_v36  ;;  %1801 = vmatprep.mubr.msk.f32.mxu1 %vm2018_vm1, %v2017_v34 }
 0x6c6   :  { %1809 = vmatprep.subr.mxu1 %v2017_v34 }
 0x6c8   :  { %1802 = vmatmul.mubr.msk.f32.vlgmr.msra.gmra.mxu1 %vm208_vm2, %v943_v40  ;;  %v1559_v40 = vld [vmem:[#allocation8 + $0x18] sm:$0xff] }
 0x6c9   :  { %1811 = vmatprep.mubr.msk.f32.mxu1 %vm2018_vm1, %v2017_v34 }
 0x74f   :  { %v2169_v41 = vpop.f32.mrf.mxu0 }
 0x751   :  { %v1788_v42 = vpop.f32.mrf.mxu0 }
 0x752   :  { %v1556_v42 = vld [vmem:[#allocation8] sm:$0xff] }
 0x778   :  { %v938_v43 = vpop.f32.mrf.mxu0 }
 0x779   :  { %v1020_v44 = vsel %vm208_vm2, %v938_v43, -inf }
 0x77a   :  { %1021 = vmax.xlane.f32.xlu0 %v1020_v44  ;;  %v1798_v45 = vpop.f32.mrf.mxu0 }
 0x784   :  { %v2172_v46 = vpop.f32.mrf.mxu1 }
 0x786   :  { %v1793_v47 = vpop.f32.mrf.mxu1 }
 0x788   :  { %v1016_v48 = vpop.f32.mrf.mxu1 }
 0x789   :  { %v1023_v49 = vsel %vm208_vm2, %v1016_v48, -inf }
 0x78a   :  { %1024 = vmax.xlane.f32.xlu1 %v1023_v49  ;;  %v1803_v50 = vpop.f32.mrf.mxu1 }
 0x79b   :  { %1118 = vrot.lane.b32.xlu1 %v2091_v37, %s2026_s14 }
 0x79f   :  { %1196 = vrot.lane.b32.xlu1 %v2093_v39, %s2027_s15 }
 0x7a3   :  { %1274 = vrot.lane.b32.xlu1 %v2091_v37, %s2027_s15 }
 0x7a7   :  { %1272 = vrot.lane.b32.xlu1 %v2091_v37, %s2028_s16 }
 0x803   :  { %v1022_v51 = vpop.xlane.xlu0 %1021 }
 0x804   :  { %v1026_v52 = vsub.f32 %v938_v43, %v1022_v51 }
 0x806   :  { %v1028_v53 = vmul.f32 1.442695, %v1026_v52 }
 0x808   :  { %1887 = vpow2.f32 %v1028_v53 }
 0x813   :  { %v1025_v54 = vpop.xlane.xlu1 %1024 }
 0x814   :  { %v1027_v58 = vsub.f32 %v1016_v48, %v1025_v54 }
 0x815   :  { %v1888_v55 = vpop.eup %1887 }
 0x816   :  { %v1032_v56 = vsel %vm208_vm2, %v1888_v55, 0.0  ;;  %v1030_v59 = vmul.f32 1.442695, %v1027_v58 }
 0x817   :  { %1033 = vadd.xlane.f32.xlu0 %v1032_v56  ;;  %v1119_v57 = vpop.permute.xlu1 %1118 }
 0x818   :  { %1810 = vmatpush3.msra.mxu1 %v1119_v57  ;;  %1889 = vpow2.f32 %v1030_v59  ;;  %v1696_v59 = vld [vmem:[#allocation5 + $0x3] ss:$0 sm:$0xff] }
 0x819   :  { %1819 = vmatprep.subr.mxu1 %v2017_v34 }
 0x81b   :  { %v1197_v2 = vpop.permute.xlu1 %1196 }
 0x81f   :  { %v1275_v6 = vpop.permute.xlu1 %1274 }
 0x823   :  { %v1273_v8 = vpop.permute.xlu1 %1272 }
 0x825   :  { %v1890_v60 = vpop.eup %1889 }
 0x826   :  { %v1035_v61 = vsel %vm208_vm2, %v1890_v60, 0.0 }
 0x82d   :  { %1042 = vrot.lane.b32.xlu0 %v2093_v39, %s2026_s14 }
 0x84c   :  { %1036 = vadd.xlane.f32.xlu0 %v1035_v61 }
 0x862   :  { %1194 = vrot.lane.b32.xlu0 %v2093_v39, %s2028_s16 }
 0x8a0   :  { %v1034_v62 = vpop.xlane.xlu0 %1033 }
 0x8a1   :  { %1891 = vrcp.f32 %v1034_v62 }
 0x8a4   :  { %v1043_v63 = vpop.permute.xlu0 %1042 }
 0x8a5   :  { %1805 = vmatpush3.msra.mxu0 %v1043_v63 }
 0x8a6   :  { %1814 = vmatprep.subr.mxu0 %v2017_v34 }
 0x8ae   :  { %v1892_v0 = vpop.eup %1891 }
 0x8af   :  { %v1040_v1 = vmul.f32 %v1892_v0, %v1888_v55 }
 0x8b1   :  { %1807 = vmatmul.mubr.msk.f32.vlgmr.msra.gmra.mxu0 %vm208_vm2, %v1040_v1 }
 0x8b2   :  { %1815 = vmatpush3.xpose.msk.msra.mxu0 %vm208_vm2, %v1197_v2  ;;  %1816 = vmatprep.mubr.msk.f32.mxu0 %vm2018_vm1, %v2017_v34 }
 0x8b3   :  { %1824 = vmatprep.subr.mxu0 %v2017_v34 }
 0x8d5   :  { %v1037_v3 = vpop.xlane.xlu0 %1036 }
 0x8d6   :  { %1893 = vrcp.f32 %v1037_v3 }
 0x8d9   :  { %v1195_v4 = vpop.permute.xlu0 %1194 }
 0x8da   :  { %1817 = vmatmul.mubr.msk.f32.vlgmr.msra.gmra.mxu0 %vm208_vm2, %v1195_v4 }
 0x8db   :  { %1826 = vmatprep.mubr.msk.f32.mxu0 %vm2018_vm1, %v2017_v34 }
 0x8e3   :  { %v1894_v5 = vpop.eup %1893 }
 0x8e4   :  { %v1041_v7 = vmul.f32 %v1894_v5, %v1890_v60 }
 0x8e6   :  { %1812 = vmatmul.mubr.msk.f32.vlgmr.msra.gmra.mxu1 %vm208_vm2, %v1041_v7 }
 0x8e7   :  { %1820 = vmatpush3.xpose.msk.msra.mxu1 %vm208_vm2, %v1275_v6  ;;  %1821 = vmatprep.mubr.msk.f32.mxu1 %vm2018_vm1, %v2017_v34 }
 0x8e8   :  { %1829 = vmatprep.subr.mxu1 %v2017_v34 }
 0x8ea   :  { %1822 = vmatmul.mubr.msk.f32.vlgmr.msra.gmra.mxu1 %vm208_vm2, %v1273_v8 }
 0x8eb   :  { %1831 = vmatprep.mubr.msk.f32.mxu1 %vm2018_vm1, %v2017_v34 }
 0x971   :  { %v1114_v10 = vpop.f32.mrf.mxu0 }
 0x973   :  { %v1808_v12 = vpop.f32.mrf.mxu0 }
 0x99a   :  { %v1268_v13 = vpop.f32.mrf.mxu0 }
 0x99b   :  { %v1350_v14 = vsel %vm208_vm2, %v1268_v13, -inf }
 0x99c   :  { %1351 = vmax.xlane.f32.xlu0 %v1350_v14  ;;  %v1818_v15 = vpop.f32.mrf.mxu0 }
 0x9a6   :  { %v1190_v16 = vpop.f32.mrf.mxu1 }
 0x9a8   :  { %v1813_v17 = vpop.f32.mrf.mxu1 }
 0x9aa   :  { %v1346_v18 = vpop.f32.mrf.mxu1 }
 0x9ab   :  { %v1353_v19 = vsel %vm208_vm2, %v1346_v18, -inf }
 0x9ac   :  { %1354 = vmax.xlane.f32.xlu1 %v1353_v19  ;;  %v1823_v20 = vpop.f32.mrf.mxu1 }
 0x9bd   :  { %1448 = vrot.lane.b32.xlu1 %v2091_v37, %s2029_s17 }
 0x9c1   :  { %1526 = vrot.lane.b32.xlu1 %v2169_v41, %s2014_s24  ;;  %v1558_v41 = vld [vmem:[#allocation8 + $0x10] sm:$0xff] }
 0x9c5   :  { %1528 = vrot.lane.b32.xlu1 %v2172_v46, %s2014_s24 }
 0x9c9   :  { %1536 = vrot.lane.b32.xlu1 %v1190_v16, %s2030_s18 }
 0xa25   :  { %v1352_v34 = vpop.xlane.xlu0 %1351 }
 0xa26   :  { %v1356_v21 = vsub.f32 %v1268_v13, %v1352_v34 }
 0xa28   :  { %v1358_v22 = vmul.f32 1.442695, %v1356_v21 }
 0xa2a   :  { %1895 = vpow2.f32 %v1358_v22 }
 0xa35   :  { %v1355_v23 = vpop.xlane.xlu1 %1354 }
 0xa36   :  { %v1357_v24 = vsub.f32 %v1346_v18, %v1355_v23 }
 0xa37   :  { %v1896_v25 = vpop.eup %1895 }
 0xa38   :  { %v1360_v26 = vmul.f32 1.442695, %v1357_v24  ;;  %v1362_v27 = vsel %vm208_vm2, %v1896_v25, 0.0 }
 0xa39   :  { %1363 = vadd.xlane.f32.xlu0 %v1362_v27  ;;  %v1449_v37 = vpop.permute.xlu1 %1448 }
 0xa3a   :  { %1897 = vpow2.f32 %v1360_v26  ;;  %1830 = vmatpush3.msra.mxu1 %v1449_v37 }
 0xa3d   :  { %v1527_v47 = vpop.permute.xlu1 %1526 }
 0xa3e   :  { %v1548_v49 = vsel %vm208_vm2, %v2138_v9, %v1527_v47 }
 0xa41   :  { %v1529_v52 = vpop.permute.xlu1 %1528 }
 0xa42   :  { %v1549_v55 = vsel %vm208_vm2, %v2140_v11, %v1529_v52 }
 0xa45   :  { %v1537_v54 = vpop.permute.xlu1 %1536 }
 0xa46   :  { %v1552_v56 = vsel %vm1550_vm4, %v1549_v55, %v1537_v54 }
 0xa47   :  { %v1898_v28 = vpop.eup %1897 }
 0xa48   :  { %v1365_v29 = vsel %vm208_vm2, %v1898_v28, 0.0 }
 0xa49   :  { %1366 = vadd.xlane.f32.xlu0 %v1365_v29 }
 0xa5f   :  { %1372 = vrot.lane.b32.xlu0 %v2093_v39, %s2029_s17  ;;  %v1557_v39 = vld [vmem:[#allocation8 + $0x8] sm:$0xff] }
 0xa63   :  { %1534 = vrot.lane.b32.xlu0 %v1114_v10, %s2030_s18 }
 0xac2   :  { %v1364_v30 = vpop.xlane.xlu0 %1363 }
 0xac3   :  { %1899 = vrcp.f32 %v1364_v30 }
 0xad0   :  { %v1900_v32 = vpop.eup %1899 }
 0xad1   :  { %v1370_v35 = vmul.f32 %v1900_v32, %v1896_v25 }
 0xad2   :  { %v1367_v31 = vpop.xlane.xlu0 %1366 }
 0xad3   :  { %1901 = vrcp.f32 %v1367_v31 }
 0xad6   :  { %v1373_v33 = vpop.permute.xlu0 %1372 }
 0xad7   :  { %1825 = vmatpush3.msra.mxu0 %v1373_v33 }
 0xad8   :  { %1827 = vmatmul.mubr.msk.f32.vlgmr.msra.gmra.mxu0 %vm208_vm2, %v1370_v35  ;;  %1834 = vmatprep.subr.mxu0 %v1559_v40 }
 0xad9   :  { %1835 = vmatpush3.msra.mxu0 %v1559_v40 }
 0xada   :  { %1836 = vmatprep.subr.mxu0 %v1558_v41  ;;  %v1535_v48 = vpop.permute.xlu0 %1534 }
 0xadb   :  { %1837 = vmatpush3.msra.mxu0 %v1558_v41  ;;  %v1551_v50 = vsel %vm1550_vm4, %v1548_v49, %v1535_v48 }
 0xadc   :  { %1838 = vmatprep.subr.mxu0 %v1557_v39 }
 0xadd   :  { %1839 = vmatpush3.msra.mxu0 %v1557_v39 }
 0xade   :  { %1840 = vmatprep.subr.mxu0 %v1556_v42 }
 0xadf   :  { %1841 = vmatpush3.msra.mxu0 %v1556_v42 }
 0xae0   :  { %v1902_v36 = vpop.eup %1901 }
 0xae1   :  { %v1371_v38 = vmul.f32 %v1902_v36, %v1898_v28 }
 0xae3   :  { %1832 = vmatmul.mubr.msk.f32.vlgmr.msra.gmra.mxu1 %vm208_vm2, %v1371_v38 }
 0xb98   :  { %v1444_v43 = vpop.f32.mrf.mxu0 }
 0xb99   :  { %1542 = vrot.lane.b32.xlu0 %v1444_v43, %s2031_s19 }
 0xb9a   :  { %v1828_v44 = vpop.f32.mrf.mxu0 }
 0xba3   :  { %v1520_v45 = vpop.f32.mrf.mxu1 }
 0xba4   :  { %1544 = vrot.lane.b32.xlu1 %v1520_v45, %s2031_s19 }
 0xba5   :  { %v1833_v46 = vpop.f32.mrf.mxu1 }
 0xc0b   :  { %v1543_v51 = vpop.permute.xlu0 %1542 }
 0xc0c   :  { %v1554_v53 = vsel %vm1553_vm3, %v1551_v50, %v1543_v51 }
 0xc0d   :  { %1842 = vmatprep.mubr.msk.f32.mxu0 %vm73_vm0, %v1554_v53 }
 0xc16   :  { %v1545_v57 = vpop.permute.xlu1 %1544 }
 0xc17   :  { %v1555_v58 = vsel %vm1553_vm3, %v1552_v56, %v1545_v57 }
 0xc18   :  { %1843 = vmatmul.mubr.msk.f32.vlgmr.msra.gmra.mxu0 %vm73_vm0, %v1555_v58 }
 0xcd8   :  { %v1844_v60 = vpop.f32.mrf.mxu0 }
 0xcd9   :  { %v1643_v9 = vadd.f32 %v1844_v60, %v1696_v59 }
 0xcda   :  { %v1637_v61 = vpop.f32.mrf.mxu0 }
 0xcdb   :  { %1647 = vst.msk [vmem:[#allocation10 + $0x8] sm:$0xff] %vm73_vm0, %v1643_v9  ;;  %v1638_v62 = vadd.f32 %v1696_v59, %v1637_v61 }
 0xcdd   :  { %1646 = vst.msk [vmem:[#allocation10] sm:$0xff] %vm73_vm0, %v1638_v62 }
 0xcde   :  { %1994 = shalt.err (!%p1991_p10)
}
 0xcdf   :  { %1659 = dma.vmem_to_hbm [thread:$0]  %s1654_s21, 256, %s2231_s4, [#allocation4], %s2013_s23, %s2013_s23, %s2014_s24  }
 0xce0   :  { %2009 = dma.done.wait [#allocation4], 256  }
 0xce1   :  { %2010 = vsyncadd [#allocation4], 4294967040 }
 0xce2   :  { %1663 = vsyncpa [#allocation3], 1 }
 0xce3   :  { %1664 = vsyncpa [#allocation6], 1 }
 0xce4   :  { %1665 = vsyncpa [#allocation9], 1 }
 0xce5   :  { %1666 = vsyncpa [#allocation4], 1 }

</bundles_post_ra>
